<compile_context>
chip_gen: v5e
topology: v5e:2x2
jax: 0.10.0
libtpu: 0.0.40
codegen_flags: <defaults>
</compile_context>

<pallas_src>
import functools

import jax
import jax.numpy as jnp
from jax.experimental import pallas as pl
from jax.experimental.pallas import tpu as pltpu


def _round_up(x: int, m: int) -> int:
    return ((x + m - 1) // m) * m


def _cdiv(a: int, b: int) -> int:
    return (a + b - 1) // b


def _sublane(dtype) -> int:
    # Native (sublane, 128) tile: 8 rows for 4-byte, 16 for 2-byte, 32 for 1-byte.
    return max(8, 32 // jnp.dtype(dtype).itemsize)


def _vmem_capacity_bytes() -> int:
    try:
        return int(pltpu.get_tpu_info().vmem_capacity_bytes)
    except Exception:
        return 64 * 1024 * 1024  # conservative fallback (v7x per-core VMEM)


def _maybe_pad(a, pads):
    # Skip zero-amount pads so aligned weights never get an extra HBM copy.
    if all(lo == 0 and hi == 0 for lo, hi in pads):
        return a
    return jnp.pad(a, pads)


def _mlp_kernel(x_ref, w1_ref, b1_ref, w2_ref, b2_ref, o_ref, acc_ref):
    h_idx = pl.program_id(1)

    @pl.when(h_idx == 0)
    def _init():
        acc_ref[...] = jnp.zeros_like(acc_ref)

    # hidden tile = relu(x @ W1[:, h_tile] + b1[h_tile])  -- tile-local, exact.
    h = jnp.dot(x_ref[...], w1_ref[...], preferred_element_type=jnp.float32)
    h = jnp.maximum(h + b1_ref[...], 0.0)
    # TODO(synk): nn.Dropout(p=0.5) is identity in eval mode; training-mode RNG
    # masking is intentionally not applied here.
    acc_ref[...] += jnp.dot(h.astype(w2_ref.dtype), w2_ref[...],
                            preferred_element_type=jnp.float32)

    @pl.when(h_idx == pl.num_programs(1) - 1)
    def _finalize():
        o_ref[...] = (acc_ref[...] + b2_ref[...]).astype(o_ref.dtype)


@functools.partial(jax.jit, static_argnames=("compute_dtype", "tm", "th"))
def mlp_forward(x, w1, b1, w2, b2, *, compute_dtype=None, tm=None, th=None):
    """x: [..., in_dim] -> [..., out_dim], fused two-layer MLP on TPU."""
    orig_shape = x.shape
    in_dim = orig_shape[-1]
    hidden_dim = w1.shape[1]
    out_dim = w2.shape[1]

    out_dtype = x.dtype
    cdt = jnp.dtype(compute_dtype) if compute_dtype is not None else jnp.dtype(x.dtype)

    x2d = x.reshape(-1, in_dim)
    M = x2d.shape[0]

    # ---- feature-dim padding (lane-dense, multiples of 128) -----------------
    in_pad = _round_up(in_dim, 128)
    out_pad = _round_up(out_dim, 128)
    hid128 = _round_up(hidden_dim, 128)

    x_isz = cdt.itemsize
    w_isz = cdt.itemsize
    o_isz = jnp.dtype(out_dtype).itemsize
    sub = max(_sublane(cdt), _sublane(out_dtype))

    # ---- VMEM-budget-driven tile selection (all static Python) --------------
    cap = _vmem_capacity_bytes()
    budget = int(0.60 * cap)  # working-set budget; the rest is headroom

    def vmem_usage(tm_, th_):
        use = 2 * tm_ * in_pad * x_isz                        # x tile (double-buffered)
        use += 2 * tm_ * out_pad * o_isz                      # out tile
        use += 2 * (in_pad * th_ + th_ * out_pad) * w_isz     # W1/W2 tiles
        use += 2 * (th_ + out_pad) * 4                        # f32 bias tiles
        use += tm_ * out_pad * 4                              # f32 accumulator scratch
        use += tm_ * th_ * 4 + tm_ * th_ * w_isz              # f32 hidden + cast copy
        use += 2 * 1024 * 1024                                # Mosaic internal scratch
        return use

    def choose_tm(target, th_):
        m_sub = _round_up(max(M, 1), sub)
        tm_ = min(_round_up(target, sub), m_sub)
        # shrink until the working set fits the VMEM budget
        while tm_ > sub and vmem_usage(tm_, th_) > budget:
            tm_ = max(sub, _round_up(tm_ // 2, sub))
        # keep >= 2 tiles on the 'parallel' axis when M allows (v7x: 2 TCs)
        if m_sub >= 2 * sub and _cdiv(m_sub, tm_) < 2:
            tm_ = _round_up(_cdiv(m_sub, 2), sub)
        # given the implied tile count, shrink tm to minimize padded-row waste
        n_tiles = _cdiv(m_sub, tm_)
        tm_ = _round_up(_cdiv(m_sub, n_tiles), sub)
        return tm_

    if th is None:
        # Weight-resident fast path: whole padded W1/W2 live in VMEM and are
        # DMA'd from HBM exactly once (constant weight block index).
        th_eff = hid128
        tm_eff = choose_tm(tm if tm is not None else 512, th_eff)
        if vmem_usage(tm_eff, th_eff) > budget:
            # Streamed-weight mode: big row tile pushes arithmetic intensity
            # (~2*tm/itemsize FLOP/byte) past the HBM roofline; shrink th
            # first when VMEM is tight (v7x), then tm.
            th_eff = min(1024, hid128)
            tm_target = tm if tm is not None else 1024
            while th_eff > 128 and vmem_usage(
                    _round_up(min(tm_target, 1024), sub), th_eff) > budget:
                th_eff = max(128, (th_eff // 2) // 128 * 128)
            tm_eff = choose_tm(tm_target, th_eff)
    else:
        th_eff = min(_round_up(th, 128), hid128)
        tm_eff = choose_tm(tm if tm is not None else 512, th_eff)

    hid_pad = _round_up(hid128, th_eff)
    M_pad = _round_up(_round_up(max(M, 1), sub), tm_eff)
    n_m = M_pad // tm_eff
    n_h = hid_pad // th_eff
    grid = (n_m, n_h)

    # ---- zero-pad + cast operands (exact: padded lanes contribute 0) --------
    xp = _maybe_pad(x2d, ((0, M_pad - M), (0, in_pad - in_dim))).astype(cdt)
    w1p = _maybe_pad(w1, ((0, in_pad - in_dim), (0, hid_pad - hidden_dim))).astype(cdt)
    w2p = _maybe_pad(w2, ((0, hid_pad - hidden_dim), (0, out_pad - out_dim))).astype(cdt)
    b1p = _maybe_pad(b1.reshape(1, -1).astype(jnp.float32),
                     ((0, 0), (0, hid_pad - hidden_dim)))
    b2p = _maybe_pad(b2.reshape(1, -1).astype(jnp.float32),
                     ((0, 0), (0, out_pad - out_dim)))

    # ---- VMEM limit: actual working set + headroom, clamped to chip capacity
    usage = vmem_usage(tm_eff, th_eff)
    vmem_limit = int(min(max(int(1.3 * usage), 32 * 1024 * 1024), int(0.75 * cap)))

    # ---- advisory cost estimate (true traffic incl. weight re-streaming) ----
    w_bytes = (in_pad * hid_pad + hid_pad * out_pad) * w_isz + (hid_pad + out_pad) * 4
    weight_passes = 1 if n_h == 1 else n_m
    flops = 2 * M_pad * (in_pad * hid_pad + hid_pad * out_pad)
    bytes_accessed = (M_pad * in_pad * x_isz + M_pad * out_pad * o_isz
                      + weight_passes * w_bytes)

    out2d = pl.pallas_call(
        _mlp_kernel,
        out_shape=jax.ShapeDtypeStruct((M_pad, out_pad), out_dtype),
        grid_spec=pltpu.PrefetchScalarGridSpec(
            num_scalar_prefetch=0,
            grid=grid,
            in_specs=[
                pl.BlockSpec((tm_eff, in_pad), lambda i, h: (i, 0)),
                pl.BlockSpec((in_pad, th_eff), lambda i, h: (0, h)),
                pl.BlockSpec((1, th_eff), lambda i, h: (0, h)),
                pl.BlockSpec((th_eff, out_pad), lambda i, h: (h, 0)),
                pl.BlockSpec((1, out_pad), lambda i, h: (0, 0)),
            ],
            out_specs=pl.BlockSpec((tm_eff, out_pad), lambda i, h: (i, 0)),
            scratch_shapes=[pltpu.VMEM((tm_eff, out_pad), jnp.float32)],
        ),
        compiler_params=pltpu.CompilerParams(
            dimension_semantics=("parallel", "arbitrary"),
            vmem_limit_bytes=vmem_limit,
        ),
        cost_estimate=pl.CostEstimate(
            flops=flops, transcendentals=0, bytes_accessed=bytes_accessed),
    )(xp, w1p, b1p, w2p, b2p)

    out2d = out2d[:M, :out_dim]
    return out2d.reshape(*orig_shape[:-1], out_dim)


def init_mlp_params(key, in_dim, hidden_dim, out_dim, dtype=jnp.float32):
    """Deterministic init mimicking nn.Linear: U(-1/sqrt(fan_in), 1/sqrt(fan_in))."""
    k1, k2, k3, k4 = jax.random.split(key, 4)
    bound1 = 1.0 / (in_dim ** 0.5)
    bound2 = 1.0 / (hidden_dim ** 0.5)
    # PyTorch stores weights as (out, in); we keep (in, out) so the kernel does
    # x @ W directly (equivalent to x @ W_pt.T).
    w1 = jax.random.uniform(k1, (in_dim, hidden_dim), dtype, -bound1, bound1)
    b1 = jax.random.uniform(k2, (1, hidden_dim), dtype, -bound1, bound1)
    w2 = jax.random.uniform(k3, (hidden_dim, out_dim), dtype, -bound2, bound2)
    b2 = jax.random.uniform(k4, (1, out_dim), dtype, -bound2, bound2)
    return w1, b1, w2, b2


if __name__ == "__main__":
    key = jax.random.PRNGKey(0)
    kx, kp = jax.random.split(key)

    batch, seq = 2, 8
    in_dim, hidden_dim, out_dim = 16, 32, 16

    x = jax.random.normal(kx, (batch, seq, in_dim), jnp.float32)
    w1, b1, w2, b2 = init_mlp_params(kp, in_dim, hidden_dim, out_dim)

    # Default (native f32) path.
    out = mlp_forward(x, w1, b1, w2, b2)
    out = jax.block_until_ready(out)

    # reference check (plain JAX)
    ref = jnp.maximum(x.reshape(-1, in_dim) @ w1 + b1, 0.0) @ w2 + b2
    ref = ref.reshape(batch, seq, out_dim)
    assert out.shape == (batch, seq, out_dim)
    assert jnp.allclose(out, ref, atol=2e-5, rtol=2e-5)

    # bf16-MXU precision knob (v5e/v6e/v7x fast path); f32 accumulation kept.
    out_bf16 = mlp_forward(x, w1, b1, w2, b2, compute_dtype=jnp.bfloat16)
    out_bf16 = jax.block_until_ready(out_bf16)
    assert jnp.allclose(out_bf16, ref, atol=5e-2, rtol=5e-2)

    print("KERNEL_OK")
</pallas_src>

<mosaic_0001>
module attributes {stable_mosaic.version = 11 : i64} {
  func.func @_mlp_kernel(%arg0: i32, %arg1: i32, %arg2: memref<8x128xf32, #tpu.memory_space<vmem>>, %arg3: memref<128x128xf32, #tpu.memory_space<vmem>>, %arg4: memref<1x128xf32, #tpu.memory_space<vmem>>, %arg5: memref<128x128xf32, #tpu.memory_space<vmem>>, %arg6: memref<1x128xf32, #tpu.memory_space<vmem>>, %arg7: memref<8x128xf32, #tpu.memory_space<vmem>>, %arg8: memref<8x128xf32, #tpu.memory_space<vmem>>) attributes {dimension_semantics = [#tpu.dimension_semantics<parallel>, #tpu.dimension_semantics<arbitrary>], iteration_bounds = array<i64: 2, 1>, scalar_prefetch = 0 : i64, scratch_operands = 1 : i64, tpu.core_type = #tpu.core_type<tc>, window_params = [{transform_indices = @transform_0, window_bounds = array<i64: 8, 128>}, {transform_indices = @transform_1, window_bounds = array<i64: 128, 128>}, {transform_indices = @transform_2, window_bounds = array<i64: 1, 128>}, {transform_indices = @transform_3, window_bounds = array<i64: 128, 128>}, {pipeline_mode = #tpu.pipeline_mode<synchronous>, transform_indices = @transform_4, window_bounds = array<i64: 1, 128>}, {transform_indices = @transform_5, window_bounds = array<i64: 8, 128>}]} {
    %c0_i32 = arith.constant 0 : i32
    %0 = arith.cmpi eq, %arg1, %c0_i32 : i32
    %1 = arith.extui %0 : i1 to i32
    %c0_i32_0 = arith.constant 0 : i32
    %2 = arith.cmpi ne, %1, %c0_i32_0 : i32
    scf.if %2 {
      %cst_16 = arith.constant 0.000000e+00 : f32
      %19 = vector.broadcast %cst_16 : f32 to vector<8x128xf32>
      %c0_17 = arith.constant 0 : index
      %c0_18 = arith.constant 0 : index
      %20 = vector.load %arg8[%c0_17, %c0_18] : memref<8x128xf32, #tpu.memory_space<vmem>>, vector<8x128xf32>
      tpu.vector_store %arg8[%c0_17, %c0_18], %19 {strides = array<i32>} : memref<8x128xf32, #tpu.memory_space<vmem>>, vector<8x128xf32>,
    } else {
    }
    %c0 = arith.constant 0 : index
    %c0_1 = arith.constant 0 : index
    %3 = vector.load %arg2[%c0, %c0_1] : memref<8x128xf32, #tpu.memory_space<vmem>>, vector<8x128xf32>
    %c0_2 = arith.constant 0 : index
    %c0_3 = arith.constant 0 : index
    %4 = vector.load %arg3[%c0_2, %c0_3] : memref<128x128xf32, #tpu.memory_space<vmem>>, vector<128x128xf32>
    %cst = arith.constant dense<0.000000e+00> : vector<8x128xf32>
    %5 = tpu.matmul %3, %4, %cst {dimension_numbers = #tpu.dot_dimension_numbers<[1], [0], [0], [1], [0, 0, 1, 1], [], []>} : vector<8x128xf32>, vector<128x128xf32>, vector<8x128xf32> -> vector<8x128xf32>
    %c0_4 = arith.constant 0 : index
    %c0_5 = arith.constant 0 : index
    %6 = vector.load %arg4[%c0_4, %c0_5] : memref<1x128xf32, #tpu.memory_space<vmem>>, vector<1x128xf32>
    %7 = vector.broadcast %6 : vector<1x128xf32> to vector<8x128xf32>
    %8 = arith.addf %5, %7 : vector<8x128xf32>
    %cst_6 = arith.constant 0.000000e+00 : f32
    %9 = vector.broadcast %cst_6 : f32 to vector<8x128xf32>
    %10 = arith.maximumf %8, %9 : vector<8x128xf32>
    %c0_7 = arith.constant 0 : index
    %c0_8 = arith.constant 0 : index
    %11 = vector.load %arg8[%c0_7, %c0_8] : memref<8x128xf32, #tpu.memory_space<vmem>>, vector<8x128xf32>
    %c0_9 = arith.constant 0 : index
    %c0_10 = arith.constant 0 : index
    %12 = vector.load %arg5[%c0_9, %c0_10] : memref<128x128xf32, #tpu.memory_space<vmem>>, vector<128x128xf32>
    %cst_11 = arith.constant dense<0.000000e+00> : vector<8x128xf32>
    %13 = tpu.matmul %10, %12, %cst_11 {dimension_numbers = #tpu.dot_dimension_numbers<[1], [0], [0], [1], [0, 0, 1, 1], [], []>} : vector<8x128xf32>, vector<128x128xf32>, vector<8x128xf32> -> vector<8x128xf32>
    %14 = arith.addf %11, %13 : vector<8x128xf32>
    %c0_12 = arith.constant 0 : index
    %c0_13 = arith.constant 0 : index
    %15 = vector.load %arg8[%c0_12, %c0_13] : memref<8x128xf32, #tpu.memory_space<vmem>>, vector<8x128xf32>
    tpu.vector_store %arg8[%c0_12, %c0_13], %14 {strides = array<i32>} : memref<8x128xf32, #tpu.memory_space<vmem>>, vector<8x128xf32>,
    %c0_i32_14 = arith.constant 0 : i32
    %16 = arith.cmpi eq, %arg1, %c0_i32_14 : i32
    %17 = arith.extui %16 : i1 to i32
    %c0_i32_15 = arith.constant 0 : i32
    %18 = arith.cmpi ne, %17, %c0_i32_15 : i32
    scf.if %18 {
      %c0_16 = arith.constant 0 : index
      %c0_17 = arith.constant 0 : index
      %19 = vector.load %arg8[%c0_16, %c0_17] : memref<8x128xf32, #tpu.memory_space<vmem>>, vector<8x128xf32>
      %c0_18 = arith.constant 0 : index
      %c0_19 = arith.constant 0 : index
      %20 = vector.load %arg6[%c0_18, %c0_19] : memref<1x128xf32, #tpu.memory_space<vmem>>, vector<1x128xf32>
      %21 = vector.broadcast %20 : vector<1x128xf32> to vector<8x128xf32>
      %22 = arith.addf %19, %21 : vector<8x128xf32>
      %c0_20 = arith.constant 0 : index
      %c0_21 = arith.constant 0 : index
      %23 = vector.load %arg7[%c0_20, %c0_21] : memref<8x128xf32, #tpu.memory_space<vmem>>, vector<8x128xf32>
      tpu.vector_store %arg7[%c0_20, %c0_21], %22 {strides = array<i32>} : memref<8x128xf32, #tpu.memory_space<vmem>>, vector<8x128xf32>,
    } else {
    }
    return
  }
  func.func @transform_0(%arg0: i32, %arg1: i32) -> (i32, i32) {
    %c0_i32 = arith.constant 0 : i32
    %c0_i32_0 = arith.constant 0 : i32
    return %arg0, %c0_i32 : i32, i32
  }
  func.func @transform_1(%arg0: i32, %arg1: i32) -> (i32, i32) {
    %c0_i32 = arith.constant 0 : i32
    %c0_i32_0 = arith.constant 0 : i32
    return %c0_i32, %arg1 : i32, i32
  }
  func.func @transform_2(%arg0: i32, %arg1: i32) -> (i32, i32) {
    %c0_i32 = arith.constant 0 : i32
    %c0_i32_0 = arith.constant 0 : i32
    return %c0_i32, %arg1 : i32, i32
  }
  func.func @transform_3(%arg0: i32, %arg1: i32) -> (i32, i32) {
    %c0_i32 = arith.constant 0 : i32
    %c0_i32_0 = arith.constant 0 : i32
    return %arg1, %c0_i32 : i32, i32
  }
  func.func @transform_4(%arg0: i32, %arg1: i32) -> (i32, i32) {
    %c0_i32 = arith.constant 0 : i32
    %c0_i32_0 = arith.constant 0 : i32
    %c0_i32_1 = arith.constant 0 : i32
    return %c0_i32, %c0_i32_0 : i32, i32
  }
  func.func @transform_5(%arg0: i32, %arg1: i32) -> (i32, i32) {
    %c0_i32 = arith.constant 0 : i32
    %c0_i32_0 = arith.constant 0 : i32
    return %arg0, %c0_i32 : i32, i32
  }
}

</mosaic_0001>

<bundles_post_ra>
// kernel: mlp_forward.1
= control target key start
LH: loop header
LB: loop body
LE: loop exit
PB: predicated region body
PF: predicated region fallthrough
CT: control target
= control target key end

     0   :  { %s577_s18 = smov 0   ;;  %s579_s19 = smov 0   ;;  %s723_s0 = inlined_call_operand.vmem [shape: f32[16,128], index: 0, kind: input, shape index: {}]   ;;  %s724_s1 = inlined_call_operand.vmem [shape: f32[128,128], index: 1, kind: input, shape index: {}]   ;;  %s725_s2 = inlined_call_operand.vmem [shape: f32[1,128], index: 2, kind: input, shape index: {}]   ;;  %s726_s3 = inlined_call_operand.vmem [shape: f32[128,128], index: 3, kind: input, shape index: {}]   ;;  %s727_s4 = inlined_call_operand.vmem [shape: f32[1,128], index: 4, kind: input, shape index: {}]   ;;  %s728_s5 = inlined_call_operand.vmem [shape: f32[16,128], index: 5, kind: output, shape index: {}]  }
   0x1   :  { %s581_s20 = smov 0  }
   0x2 LB: > { %s27_s21 = sadd.s32 1, %s541_s19  ;;  %p492_p0 = scmp.ge.s32.totalorder %s545_s20, 1  ;;  %s545_s20 = sphi %s581_s20, %s15_s20   ;;  %s541_s19 = sphi %s579_s19, %s730_s19   ;;  %s537_s18 = sphi %s577_s18, %s729_s18  }
   0x3   : > { %p29_p1 = scmp.ge.s32.totalorder %s27_s21, 2  ;;  %p226_p2 = scmp.lt.s32.totalorder %s545_s20, 3 }
   0x5   : > { %s732_s21 = smov (%p29_p1, %s27_s21), 0  ;;  %p227_p3 = pnand %p492_p0, %p226_p2 }
   0x6   : > { %p264_p4 = scmp.lt.s32.totalorder (!%p227_p3), %s537_s18, 1 }
   0x7   : > { %230 = sbr.rel (%p227_p3) target bundleno = 303 (0x12f), region = 40 }
   0xc   : > { %v306_v0 = vld [vmem:[%s724_s1 + $0x78] sm:$0xff]  ;;  %v305_v1 = vld [vmem:[%s724_s1 + $0x70] sm:$0xff]  ;;  %v304_v2 = vld [vmem:[%s724_s1 + $0x68] sm:$0xff]  ;;  %s734_s18 = smov (!%p264_p4, %s537_s18), 1 }
   0xd   : > { %311 = vmatpush.msra.mxu0 %v306_v0  ;;  %v303_v3 = vld [vmem:[%s724_s1 + $0x60] sm:$0xff]  ;;  %v348_v4 = vld [vmem:[%s726_s3 + $0x78] sm:$0xff]  ;;  %v347_v5 = vld [vmem:[%s726_s3 + $0x70] sm:$0xff]  ;;  %s493_s26 = sshll.u32 %s734_s18, 3 }
   0xe   : > { %v302_v6 = vld [vmem:[%s724_s1 + $0x58] sm:$0xff]  ;;  %349 = vmatpush.msra.mxu1 %v348_v4  ;;  %v346_v7 = vld [vmem:[%s726_s3 + $0x68] sm:$0xff]  ;;  %v301_v8 = vld [vmem:[%s724_s1 + $0x50] sm:$0xff]  ;;  %s267_s12 = scalar_lea.vmem %s723_s0, %s493_s26  ;;  %s284_s9 = scalar_lea.vmem %s728_s5, %s493_s26 }
   0xf   : > { %312 = vmatpush.msra.mxu0 %v305_v1  ;;  %v345_v9 = vld [vmem:[%s726_s3 + $0x60] sm:$0xff]  ;;  %v300_v10 = vld [vmem:[%s724_s1 + $0x48] sm:$0xff]  ;;  %v344_v11 = vld [vmem:[%s726_s3 + $0x58] sm:$0xff] }
  0x10   : > { %350 = vmatpush.msra.mxu1 %v347_v5  ;;  %v299_v12 = vld [vmem:[%s724_s1 + $0x40] sm:$0xff]  ;;  %v343_v13 = vld [vmem:[%s726_s3 + $0x50] sm:$0xff]  ;;  %v298_v14 = vld [vmem:[%s724_s1 + $0x38] sm:$0xff] }
  0x11   : > { %313 = vmatpush.msra.mxu0 %v304_v2  ;;  %v342_v15 = vld [vmem:[%s726_s3 + $0x48] sm:$0xff]  ;;  %v297_v16 = vld [vmem:[%s724_s1 + $0x30] sm:$0xff]  ;;  %v341_v17 = vld [vmem:[%s726_s3 + $0x40] sm:$0xff] }
  0x12   : > { %351 = vmatpush.msra.mxu1 %v346_v7  ;;  %v296_v18 = vld [vmem:[%s724_s1 + $0x28] sm:$0xff]  ;;  %v340_v19 = vld [vmem:[%s726_s3 + $0x38] sm:$0xff]  ;;  %v295_v20 = vld [vmem:[%s724_s1 + $0x20] sm:$0xff] }
  0x13   : > { %314 = vmatpush.msra.mxu0 %v303_v3  ;;  %v339_v21 = vld [vmem:[%s726_s3 + $0x30] sm:$0xff]  ;;  %v294_v22 = vld [vmem:[%s724_s1 + $0x18] sm:$0xff]  ;;  %v338_v23 = vld [vmem:[%s726_s3 + $0x28] sm:$0xff] }
  0x14   : > { %352 = vmatpush.msra.mxu1 %v345_v9  ;;  %v293_v24 = vld [vmem:[%s724_s1 + $0x10] sm:$0xff]  ;;  %v337_v25 = vld [vmem:[%s726_s3 + $0x20] sm:$0xff]  ;;  %v292_v26 = vld [vmem:[%s724_s1 + $0x8] sm:$0xff] }
  0x15   : > { %315 = vmatpush.msra.mxu0 %v302_v6  ;;  %v336_v27 = vld [vmem:[%s726_s3 + $0x18] sm:$0xff]  ;;  %v291_v28 = vld [vmem:[%s724_s1] sm:$0xff]  ;;  %v335_v30 = vld [vmem:[%s726_s3 + $0x10] sm:$0xff] }
  0x16   : > { %353 = vmatpush.msra.mxu1 %v344_v11  ;;  %v290_v29 = vld [vmem:[%s267_s12] sm:$0xff]  ;;  %v334_v31 = vld [vmem:[%s726_s3 + $0x8] sm:$0xff] }
  0x17   : > { %316 = vmatpush.msra.mxu0 %v301_v8  ;;  %v333_v32 = vld [vmem:[%s726_s3] sm:$0xff] }
  0x18   : > { %354 = vmatpush.msra.mxu1 %v343_v13  ;;  %v521_v33 = vld [vmem:[%s725_s2] ss:$0 sm:$0xff] }
  0x19   : > { %317 = vmatpush.msra.mxu0 %v300_v10  ;;  %v522_v37 = vld [vmem:[%s727_s4] ss:$0 sm:$0xff] }
  0x1a   : > { %355 = vmatpush.msra.mxu1 %v342_v15 }
  0x1b   : > { %318 = vmatpush.msra.mxu0 %v299_v12 }
  0x1c   : > { %356 = vmatpush.msra.mxu1 %v341_v17 }
  0x1d   : > { %319 = vmatpush.msra.mxu0 %v298_v14 }
  0x1e   : > { %357 = vmatpush.msra.mxu1 %v340_v19 }
  0x1f   : > { %320 = vmatpush.msra.mxu0 %v297_v16 }
  0x20   : > { %358 = vmatpush.msra.mxu1 %v339_v21 }
  0x21   : > { %321 = vmatpush.msra.mxu0 %v296_v18 }
  0x22   : > { %359 = vmatpush.msra.mxu1 %v338_v23 }
  0x23   : > { %322 = vmatpush.msra.mxu0 %v295_v20 }
  0x24   : > { %360 = vmatpush.msra.mxu1 %v337_v25 }
  0x25   : > { %323 = vmatpush.msra.mxu0 %v294_v22 }
  0x26   : > { %361 = vmatpush.msra.mxu1 %v336_v27 }
  0x27   : > { %324 = vmatpush.msra.mxu0 %v293_v24 }
  0x28   : > { %362 = vmatpush.msra.mxu1 %v335_v30 }
  0x29   : > { %325 = vmatpush.msra.mxu0 %v292_v26 }
  0x2a   : > { %363 = vmatpush.msra.mxu1 %v334_v31 }
  0x2b   : > { %326 = vmatpush.msra.mxu0 %v291_v28 }
  0x2c   : > { %327 = vmatmul.f32.vlgmr.msra.gmra.mxu0 %v290_v29  ;;  %364 = vmatpush.msra.mxu1 %v333_v32 }
  0xa9   : > { %v328_v34 = vpop.f32.mrf.mxu0 }
  0xaa   : > { %v329_v35 = vadd.f32 %v521_v33, %v328_v34 }
  0xac   : > { %v331_v36 = vmax.f32 %v329_v35, 0.0 }
  0xae   : > { %365 = vmatmul.f32.vlgmr.msra.gmra.mxu1 %v331_v36 }
 0x12b   : > { %v366_v38 = vpop.f32.mrf.mxu1 }
 0x12c   : > { %v379_v39 = vadd.f32 %v522_v37, %v366_v38 }
 0x12e   : > { %380 = vst [vmem:[%s284_s9] sm:$0xff] %v379_v39 }
 0x12f PF: > { %s15_s20 = sadd.s32 1, %s545_s20   ;;  %s729_s18 = smov %s541_s19 }
 0x130   : > { %p12_p5 = scmp.ge.s32.totalorder %s15_s20, 4   ;;  %s730_s19 = smov %s732_s21 }
 0x132   :  { %14 = sbr.rel (!%p12_p5) target bundleno = 2 (0x2), region = 87 }

</bundles_post_ra>
